<compile_context>
chip_gen: v7x
topology: tpu7x:2x2x1
jax: 0.10.0
libtpu: 0.0.40
codegen_flags: <defaults>
</compile_context>

<pallas_src>
import functools
import math

import jax
import jax.numpy as jnp
from jax.experimental import pallas as pl
from jax.experimental.pallas import tpu as pltpu


# ----------------------------- Pallas kernel --------------------------------

def _layernorm(x, w, b, eps=1e-5):
    mu = jnp.mean(x, axis=-1, keepdims=True)
    var = jnp.mean((x - mu) ** 2, axis=-1, keepdims=True)
    return (x - mu) * jax.lax.rsqrt(var + eps) * w + b


def trier_encoder_kernel(x_ref, keypad_ref, gidx_ref,
                         ln0w_ref, ln0b_ref,
                         wq_ref, bq_ref, wkv_ref, bkv_ref,
                         wo_ref, bo_ref,
                         ln1w_ref, ln1b_ref,
                         w1_ref, b1_ref, w2_ref, b2_ref,
                         ln2w_ref, ln2b_ref,
                         out_ref, *, inv_sqrt_h):
    TB, S, H = x_ref.shape
    cdt = wkv_ref.dtype          # matmul compute dtype (bf16 by default)

    # ---- embedding LayerNorm (self.LayerNorm), f32 math; dropout -> identity ----
    # TODO(synk): dropout (p=0.5) is stochastic; implemented as identity (eval mode).
    x = _layernorm(x_ref[...].astype(jnp.float32), ln0w_ref[0], ln0b_ref[0])   # (TB,S,H)

    # ---- fused K|V projection: the only matmul over all S positions ----
    xc = x.reshape(TB * S, H).astype(cdt)
    kv = (jnp.dot(xc, wkv_ref[...], preferred_element_type=jnp.float32)
          + bkv_ref[0]).reshape(TB, S, 2 * H)
    k = kv[:, :, :H]                                             # (TB,S,H) f32
    v = kv[:, :, H:]                                             # (TB,S,H) f32

    # ---- early gather: select hidden state at item_seq_len-1 per sequence ----
    gidx = gidx_ref[...]                                         # (TB,1) int32
    pos = jax.lax.broadcasted_iota(jnp.int32, (TB, S), 1)        # (TB,S)
    onehot = (pos == gidx).astype(jnp.float32)
    x_q = jnp.sum(onehot[:, :, None] * x, axis=1)                # (TB,H) f32

    # ---- Q projection only for the selected row ----
    q = (jnp.dot(x_q.astype(cdt), wq_ref[...], preferred_element_type=jnp.float32)
         + bq_ref[0])                                            # (TB,H) f32

    # ---- single-head attention for the single query row ----
    # scores: VPU multiply + lane reduce (no batched M=1 matmul / K transpose).
    scores = jnp.sum(q[:, None, :] * k, axis=-1) * inv_sqrt_h    # (TB,S)
    # additive mask = key padding + causal (col <= gather index), built in-kernel
    scores = scores + keypad_ref[...] + jnp.where(pos <= gidx,
                                                  jnp.float32(0.0),
                                                  jnp.float32(-1e9))
    scores = scores - jnp.max(scores, axis=-1, keepdims=True)
    p = jnp.exp(scores)
    p = p * pl.reciprocal(jnp.sum(p, axis=-1, keepdims=True), approx=True)

    attn = jnp.sum(p[:, :, None] * v, axis=1)                    # (TB,H) f32
    attn = (jnp.dot(attn.astype(cdt), wo_ref[...], preferred_element_type=jnp.float32)
            + bo_ref[0])
    x1 = _layernorm(x_q + attn, ln1w_ref[0], ln1b_ref[0])        # (TB,H)

    # ---- position-wise feed-forward (relu), only for the selected row ----
    h = jnp.maximum(jnp.dot(x1.astype(cdt), w1_ref[...],
                            preferred_element_type=jnp.float32) + b1_ref[0], 0.0)
    h = jnp.dot(h.astype(cdt), w2_ref[...],
                preferred_element_type=jnp.float32) + b2_ref[0]
    out_ref[...] = _layernorm(x1 + h, ln2w_ref[0], ln2b_ref[0])  # (TB,H)


# ------------------------------- wrappers ------------------------------------

def _choose_tile_batch(B, S, H, *, target_rows=2048, vmem_budget=8 << 20):
    """TB sequences per grid step.  Targets ~target_rows K/V rows per step under a
    rough per-step VMEM working-set budget (v7x-safe), keeps TB a multiple of 8 (or
    equal to the batch), and guarantees >=2 grid steps for B>=16 so both v7x
    TensorCores get work via the 'parallel' grid axis."""
    per_seq_bytes = 24 * S * H          # f32 temporaries + double-buffered bf16 slab (rough)
    tb = max(1, min(target_rows // max(S, 1), vmem_budget // per_seq_bytes))
    if B >= 16:
        tb = min(tb, max(8, B // 2))    # at least 2 grid steps (v7x megacore)
    if tb >= B:
        return B
    return max(8, (tb // 8) * 8)


def trier_forward(params, input_session_ids, item_seq_len=None, *,
                  tile_batch=None, compute_dtype=jnp.bfloat16,
                  vmem_limit_bytes=32 * 1024 * 1024):
    """Equivalent of TRIER_PT.forward(input_session_ids, item_seq_len) in eval mode."""
    ids = input_session_ids
    B, S = ids.shape
    H = params["item_emb"].shape[1]

    if item_seq_len is None:
        item_seq_len = jnp.sum((ids > 0).astype(jnp.int32), axis=-1)

    # Embedding-table gathers stay in plain JAX glue; ship the slab as bf16.
    pos_ids = jnp.arange(S, dtype=jnp.int32)
    x = (params["item_emb"][ids] + params["pos_emb"][pos_ids][None, :, :]).astype(compute_dtype)

    # (B,S) key-padding bias + (B,1) int32 gather index (no (B,S,S) bias, no f32 one-hot).
    keypad = jnp.where(ids == 0, jnp.float32(-1e9), jnp.float32(0.0))
    gidx = jnp.clip(item_seq_len - 1, 0, S - 1).astype(jnp.int32)[:, None]   # guard len==0

    TB = tile_batch if tile_batch is not None else _choose_tile_batch(B, S, H)
    Bp = ((B + TB - 1) // TB) * TB
    if Bp != B:
        pad = Bp - B
        x = jnp.pad(x, ((0, pad), (0, 0), (0, 0)))
        keypad = jnp.pad(keypad, ((0, pad), (0, 0)))
        gidx = jnp.pad(gidx, ((0, pad), (0, 0)))

    # Pre-transpose matmul weights to (in, out), fuse K|V, cast to compute dtype ONCE.
    # LayerNorm params and biases stay f32.
    wlist = [
        params["ln0w"], params["ln0b"],
        params["wq"].T.astype(compute_dtype), params["bq"],
        jnp.concatenate([params["wk"].T, params["wv"].T], axis=1).astype(compute_dtype),
        jnp.concatenate([params["bk"], params["bv"]], axis=1),
        params["wo"].T.astype(compute_dtype), params["bo"],
        params["ln1w"], params["ln1b"],
        params["w1"].T.astype(compute_dtype), params["b1"],
        params["w2"].T.astype(compute_dtype), params["b2"],
        params["ln2w"], params["ln2b"],
    ]

    in_specs = [
        pl.BlockSpec((TB, S, H), lambda b: (b, 0, 0)),   # bf16 activation slab
        pl.BlockSpec((TB, S), lambda b: (b, 0)),         # key-padding bias
        pl.BlockSpec((TB, 1), lambda b: (b, 0)),         # gather index (int32)
    ]
    # weights: constant block index -> not re-DMA'd across grid steps
    in_specs += [pl.BlockSpec(w.shape, lambda b: (0, 0)) for w in wlist]

    kernel = functools.partial(trier_encoder_kernel,
                               inv_sqrt_h=float(1.0 / math.sqrt(H)))

    out = pl.pallas_call(
        kernel,
        out_shape=jax.ShapeDtypeStruct((Bp, H), jnp.float32),
        grid=(Bp // TB,),
        in_specs=in_specs,
        out_specs=pl.BlockSpec((TB, H), lambda b: (b, 0)),
        compiler_params=pltpu.CompilerParams(
            dimension_semantics=("parallel",),            # shard steps over v7x's 2 TCs
            vmem_limit_bytes=vmem_limit_bytes,            # safe on all gens; raise to
        ),                                                # ~96 MiB on v5e/v6e if TB grows
    )(x, keypad, gidx, *wlist)

    return out[:B]                                        # (B, H): gather already fused


def trier_forward_reference(params, input_session_ids, item_seq_len=None):
    """Pure-JAX f32 reference of the same math, for a sanity check."""
    ids = input_session_ids
    B, S = ids.shape
    H = params["item_emb"].shape[1]
    if item_seq_len is None:
        item_seq_len = jnp.sum((ids > 0).astype(jnp.int32), axis=-1)

    pos_ids = jnp.arange(S, dtype=jnp.int32)
    x = params["item_emb"][ids] + params["pos_emb"][pos_ids][None, :, :]
    neg = jnp.float32(-1e9)
    causal = jnp.triu(jnp.full((S, S), neg, jnp.float32), k=1)
    keypad = jnp.where(ids == 0, neg, 0.0).astype(jnp.float32)
    bias = causal[None, :, :] + keypad[:, None, :]

    p = params
    x = _layernorm(x, p["ln0w"][0], p["ln0b"][0])
    q = x @ p["wq"].T + p["bq"][0]
    k = x @ p["wk"].T + p["bk"][0]
    v = x @ p["wv"].T + p["bv"][0]
    s = jnp.einsum("bqh,bkh->bqk", q, k) / math.sqrt(H) + bias
    a = jax.nn.softmax(s, axis=-1)
    attn = jnp.einsum("bqk,bkh->bqh", a, v) @ p["wo"].T + p["bo"][0]
    x = _layernorm(x + attn, p["ln1w"][0], p["ln1b"][0])
    h = jnp.maximum(x @ p["w1"].T + p["b1"][0], 0.0)
    h = h @ p["w2"].T + p["b2"][0]
    x = _layernorm(x + h, p["ln2w"][0], p["ln2b"][0])

    gidx = jnp.clip(item_seq_len - 1, 0, S - 1)
    return jnp.take_along_axis(x, gidx[:, None, None], axis=1)[:, 0, :]


# ------------------------------ parameters -----------------------------------

def init_params(key, n_items, hidden_size):
    inner = hidden_size * 4
    std = 0.02
    ks = jax.random.split(key, 10)

    def nrm(k, shape):
        return jax.random.normal(k, shape, jnp.float32) * std

    item_emb = nrm(ks[0], (n_items, hidden_size)).at[0].set(0.0)   # padding_idx=0
    pos_emb = nrm(ks[1], (100, hidden_size))

    params = dict(
        item_emb=item_emb,
        pos_emb=pos_emb,
        ln0w=jnp.ones((1, hidden_size), jnp.float32),
        ln0b=jnp.zeros((1, hidden_size), jnp.float32),
        wq=nrm(ks[2], (hidden_size, hidden_size)),
        wk=nrm(ks[3], (hidden_size, hidden_size)),
        wv=nrm(ks[4], (hidden_size, hidden_size)),
        bq=jnp.zeros((1, hidden_size), jnp.float32),
        bk=jnp.zeros((1, hidden_size), jnp.float32),
        bv=jnp.zeros((1, hidden_size), jnp.float32),
        wo=nrm(ks[5], (hidden_size, hidden_size)),
        bo=jnp.zeros((1, hidden_size), jnp.float32),
        ln1w=jnp.ones((1, hidden_size), jnp.float32),
        ln1b=jnp.zeros((1, hidden_size), jnp.float32),
        w1=nrm(ks[6], (inner, hidden_size)),
        b1=jnp.zeros((1, inner), jnp.float32),
        w2=nrm(ks[7], (hidden_size, inner)),
        b2=jnp.zeros((1, hidden_size), jnp.float32),
        ln2w=jnp.ones((1, hidden_size), jnp.float32),
        ln2b=jnp.zeros((1, hidden_size), jnp.float32),
    )
    return params


# --------------------------------- main ---------------------------------------

if __name__ == "__main__":
    N_ITEMS = 64
    HIDDEN = 32
    B, S = 4, 8

    key = jax.random.PRNGKey(0)
    kp, kd = jax.random.split(key)
    params = init_params(kp, N_ITEMS, HIDDEN)

    # left-aligned sessions: valid item ids (>0) followed by padding zeros
    lens = jnp.array([8, 5, 3, 6], dtype=jnp.int32)
    raw = jax.random.randint(kd, (B, S), 1, N_ITEMS, dtype=jnp.int32)
    valid = jnp.arange(S, dtype=jnp.int32)[None, :] < lens[:, None]
    input_session_ids = jnp.where(valid, raw, 0)
    item_seq_len = jnp.sum((input_session_ids > 0).astype(jnp.int32), axis=-1)

    out = trier_forward(params, input_session_ids, item_seq_len)
    out = jax.block_until_ready(out)

    ref = trier_forward_reference(params, input_session_ids, item_seq_len)
    assert out.shape == (B, HIDDEN)
    assert jnp.allclose(out, ref, atol=2.5e-2, rtol=2.5e-2), "mismatch vs JAX reference"

    print("KERNEL_OK")
</pallas_src>

<mosaic_0001>
module attributes {stable_mosaic.version = 11 : i64} {
  func.func @trier_encoder_kernel(%arg0: i32, %arg1: memref<4x8x32xbf16, #tpu.memory_space<vmem>>, %arg2: memref<4x8xf32, #tpu.memory_space<vmem>>, %arg3: memref<4x1xi32, #tpu.memory_space<vmem>>, %arg4: memref<1x32xf32, #tpu.memory_space<vmem>>, %arg5: memref<1x32xf32, #tpu.memory_space<vmem>>, %arg6: memref<32x32xbf16, #tpu.memory_space<vmem>>, %arg7: memref<1x32xf32, #tpu.memory_space<vmem>>, %arg8: memref<32x64xbf16, #tpu.memory_space<vmem>>, %arg9: memref<1x64xf32, #tpu.memory_space<vmem>>, %arg10: memref<32x32xbf16, #tpu.memory_space<vmem>>, %arg11: memref<1x32xf32, #tpu.memory_space<vmem>>, %arg12: memref<1x32xf32, #tpu.memory_space<vmem>>, %arg13: memref<1x32xf32, #tpu.memory_space<vmem>>, %arg14: memref<32x128xbf16, #tpu.memory_space<vmem>>, %arg15: memref<1x128xf32, #tpu.memory_space<vmem>>, %arg16: memref<128x32xbf16, #tpu.memory_space<vmem>>, %arg17: memref<1x32xf32, #tpu.memory_space<vmem>>, %arg18: memref<1x32xf32, #tpu.memory_space<vmem>>, %arg19: memref<1x32xf32, #tpu.memory_space<vmem>>, %arg20: memref<4x32xf32, #tpu.memory_space<vmem>>) attributes {dimension_semantics = [#tpu.dimension_semantics<parallel>], iteration_bounds = array<i64: 1>, scalar_prefetch = 0 : i64, scratch_operands = 0 : i64, tpu.core_type = #tpu.core_type<tc>, window_params = [{transform_indices = @transform_0, window_bounds = array<i64: 4, 8, 32>}, {transform_indices = @transform_1, window_bounds = array<i64: 4, 8>}, {transform_indices = @transform_2, window_bounds = array<i64: 4, 1>}, {pipeline_mode = #tpu.pipeline_mode<synchronous>, transform_indices = @transform_3, window_bounds = array<i64: 1, 32>}, {pipeline_mode = #tpu.pipeline_mode<synchronous>, transform_indices = @transform_4, window_bounds = array<i64: 1, 32>}, {pipeline_mode = #tpu.pipeline_mode<synchronous>, transform_indices = @transform_5, window_bounds = array<i64: 32, 32>}, {pipeline_mode = #tpu.pipeline_mode<synchronous>, transform_indices = @transform_6, window_bounds = array<i64: 1, 32>}, {pipeline_mode = #tpu.pipeline_mode<synchronous>, transform_indices = @transform_7, window_bounds = array<i64: 32, 64>}, {pipeline_mode = #tpu.pipeline_mode<synchronous>, transform_indices = @transform_8, window_bounds = array<i64: 1, 64>}, {pipeline_mode = #tpu.pipeline_mode<synchronous>, transform_indices = @transform_9, window_bounds = array<i64: 32, 32>}, {pipeline_mode = #tpu.pipeline_mode<synchronous>, transform_indices = @transform_10, window_bounds = array<i64: 1, 32>}, {pipeline_mode = #tpu.pipeline_mode<synchronous>, transform_indices = @transform_11, window_bounds = array<i64: 1, 32>}, {pipeline_mode = #tpu.pipeline_mode<synchronous>, transform_indices = @transform_12, window_bounds = array<i64: 1, 32>}, {pipeline_mode = #tpu.pipeline_mode<synchronous>, transform_indices = @transform_13, window_bounds = array<i64: 32, 128>}, {pipeline_mode = #tpu.pipeline_mode<synchronous>, transform_indices = @transform_14, window_bounds = array<i64: 1, 128>}, {pipeline_mode = #tpu.pipeline_mode<synchronous>, transform_indices = @transform_15, window_bounds = array<i64: 128, 32>}, {pipeline_mode = #tpu.pipeline_mode<synchronous>, transform_indices = @transform_16, window_bounds = array<i64: 1, 32>}, {pipeline_mode = #tpu.pipeline_mode<synchronous>, transform_indices = @transform_17, window_bounds = array<i64: 1, 32>}, {pipeline_mode = #tpu.pipeline_mode<synchronous>, transform_indices = @transform_18, window_bounds = array<i64: 1, 32>}, {transform_indices = @transform_19, window_bounds = array<i64: 4, 32>}]} {
    %c0 = arith.constant 0 : index
    %c0_0 = arith.constant 0 : index
    %c0_1 = arith.constant 0 : index
    %0 = vector.load %arg1[%c0, %c0_0, %c0_1] : memref<4x8x32xbf16, #tpu.memory_space<vmem>>, vector<4x8x32xbf16>
    %1 = arith.extf %0 : vector<4x8x32xbf16> to vector<4x8x32xf32>
    %c0_2 = arith.constant 0 : index
    %c0_3 = arith.constant 0 : index
    %2 = vector.load %arg4[%c0_2, %c0_3] : memref<1x32xf32, #tpu.memory_space<vmem>>, vector<1x32xf32>
    %3 = vector.shape_cast %2 : vector<1x32xf32> to vector<32xf32>
    %c0_4 = arith.constant 0 : index
    %c0_5 = arith.constant 0 : index
    %4 = vector.load %arg5[%c0_4, %c0_5] : memref<1x32xf32, #tpu.memory_space<vmem>>, vector<1x32xf32>
    %5 = vector.shape_cast %4 : vector<1x32xf32> to vector<32xf32>
    %cst = arith.constant dense<0.000000e+00> : vector<4x8xf32>
    %6 = vector.multi_reduction <add>, %1, %cst [2] : vector<4x8x32xf32> to vector<4x8xf32>
    %7 = vector.shape_cast %6 : vector<4x8xf32> to vector<4x8x1xf32>
    %cst_6 = arith.constant 3.200000e+01 : f32
    %8 = vector.broadcast %cst_6 : f32 to vector<4x8x1xf32>
    %9 = arith.divf %7, %8 : vector<4x8x1xf32>
    %10 = vector.broadcast %9 : vector<4x8x1xf32> to vector<4x8x32xf32>
    %11 = arith.subf %1, %10 : vector<4x8x32xf32>
    %12 = arith.mulf %11, %11 : vector<4x8x32xf32>
    %cst_7 = arith.constant dense<0.000000e+00> : vector<4x8xf32>
    %13 = vector.multi_reduction <add>, %12, %cst_7 [2] : vector<4x8x32xf32> to vector<4x8xf32>
    %14 = vector.shape_cast %13 : vector<4x8xf32> to vector<4x8x1xf32>
    %cst_8 = arith.constant 3.200000e+01 : f32
    %15 = vector.broadcast %cst_8 : f32 to vector<4x8x1xf32>
    %16 = arith.divf %14, %15 : vector<4x8x1xf32>
    %17 = vector.broadcast %9 : vector<4x8x1xf32> to vector<4x8x32xf32>
    %18 = arith.subf %1, %17 : vector<4x8x32xf32>
    %cst_9 = arith.constant 9.99999974E-6 : f32
    %19 = vector.broadcast %cst_9 : f32 to vector<4x8x1xf32>
    %20 = arith.addf %16, %19 : vector<4x8x1xf32>
    %21 = math.rsqrt %20 : vector<4x8x1xf32>
    %22 = vector.broadcast %21 : vector<4x8x1xf32> to vector<4x8x32xf32>
    %23 = arith.mulf %18, %22 : vector<4x8x32xf32>
    %24 = vector.shape_cast %3 : vector<32xf32> to vector<1x1x32xf32>
    %25 = vector.broadcast %24 : vector<1x1x32xf32> to vector<4x8x32xf32>
    %26 = arith.mulf %23, %25 : vector<4x8x32xf32>
    %27 = vector.shape_cast %5 : vector<32xf32> to vector<1x1x32xf32>
    %28 = vector.broadcast %27 : vector<1x1x32xf32> to vector<4x8x32xf32>
    %29 = arith.addf %26, %28 : vector<4x8x32xf32>
    %30 = vector.shape_cast %29 : vector<4x8x32xf32> to vector<32x32xf32>
    %31 = arith.truncf %30 : vector<32x32xf32> to vector<32x32xbf16>
    %c0_10 = arith.constant 0 : index
    %c0_11 = arith.constant 0 : index
    %32 = vector.load %arg8[%c0_10, %c0_11] : memref<32x64xbf16, #tpu.memory_space<vmem>>, vector<32x64xbf16>
    %cst_12 = arith.constant dense<0.000000e+00> : vector<32x64xf32>
    %33 = tpu.matmul %31, %32, %cst_12 {dimension_numbers = #tpu.dot_dimension_numbers<[1], [0], [0], [1], [0, 0, 1, 1], [], []>} : vector<32x32xbf16>, vector<32x64xbf16>, vector<32x64xf32> -> vector<32x64xf32>
    %c0_13 = arith.constant 0 : index
    %c0_14 = arith.constant 0 : index
    %34 = vector.load %arg9[%c0_13, %c0_14] : memref<1x64xf32, #tpu.memory_space<vmem>>, vector<1x64xf32>
    %35 = vector.shape_cast %34 : vector<1x64xf32> to vector<64xf32>
    %36 = vector.shape_cast %35 : vector<64xf32> to vector<1x64xf32>
    %37 = vector.broadcast %36 : vector<1x64xf32> to vector<32x64xf32>
    %38 = arith.addf %33, %37 : vector<32x64xf32>
    %39 = vector.shape_cast %38 : vector<32x64xf32> to vector<4x8x64xf32>
    %40 = vector.extract_strided_slice %39 {offsets = [0, 0, 0], sizes = [4, 8, 32], strides = [1, 1, 1]} : vector<4x8x64xf32> to vector<4x8x32xf32>
    %41 = vector.extract_strided_slice %39 {offsets = [0, 0, 32], sizes = [4, 8, 32], strides = [1, 1, 1]} : vector<4x8x64xf32> to vector<4x8x32xf32>
    %c0_15 = arith.constant 0 : index
    %c0_16 = arith.constant 0 : index
    %42 = vector.load %arg3[%c0_15, %c0_16] : memref<4x1xi32, #tpu.memory_space<vmem>>, vector<4x1xi32>
    %43 = tpu.iota {dimensions = array<i32: 1>} : vector<4x8xi32>
    %44 = vector.broadcast %42 : vector<4x1xi32> to vector<4x8xi32>
    %45 = arith.cmpi eq, %43, %44 : vector<4x8xi32>
    %46 = arith.extui %45 : vector<4x8xi1> to vector<4x8xi32>
    %47 = arith.sitofp %46 : vector<4x8xi32> to vector<4x8xf32>
    %48 = vector.shape_cast %47 : vector<4x8xf32> to vector<4x8x1xf32>
    %49 = vector.broadcast %48 : vector<4x8x1xf32> to vector<4x8x32xf32>
    %50 = arith.mulf %49, %29 : vector<4x8x32xf32>
    %cst_17 = arith.constant dense<0.000000e+00> : vector<4x32xf32>
    %51 = vector.multi_reduction <add>, %50, %cst_17 [1] : vector<4x8x32xf32> to vector<4x32xf32>
    %52 = arith.truncf %51 : vector<4x32xf32> to vector<4x32xbf16>
    %c0_18 = arith.constant 0 : index
    %c0_19 = arith.constant 0 : index
    %53 = vector.load %arg6[%c0_18, %c0_19] : memref<32x32xbf16, #tpu.memory_space<vmem>>, vector<32x32xbf16>
    %cst_20 = arith.constant dense<0.000000e+00> : vector<4x32xf32>
    %54 = tpu.matmul %52, %53, %cst_20 {dimension_numbers = #tpu.dot_dimension_numbers<[1], [0], [0], [1], [0, 0, 1, 1], [], []>} : vector<4x32xbf16>, vector<32x32xbf16>, vector<4x32xf32> -> vector<4x32xf32>
    %c0_21 = arith.constant 0 : index
    %c0_22 = arith.constant 0 : index
    %55 = vector.load %arg7[%c0_21, %c0_22] : memref<1x32xf32, #tpu.memory_space<vmem>>, vector<1x32xf32>
    %56 = vector.shape_cast %55 : vector<1x32xf32> to vector<32xf32>
    %57 = vector.shape_cast %56 : vector<32xf32> to vector<1x32xf32>
    %58 = vector.broadcast %57 : vector<1x32xf32> to vector<4x32xf32>
    %59 = arith.addf %54, %58 : vector<4x32xf32>
    %60 = vector.shape_cast %59 : vector<4x32xf32> to vector<4x1x32xf32>
    %61 = vector.broadcast %60 : vector<4x1x32xf32> to vector<4x8x32xf32>
    %62 = arith.mulf %61, %40 : vector<4x8x32xf32>
    %cst_23 = arith.constant dense<0.000000e+00> : vector<4x8xf32>
    %63 = vector.multi_reduction <add>, %62, %cst_23 [2] : vector<4x8x32xf32> to vector<4x8xf32>
    %cst_24 = arith.constant 0.176776692 : f32
    %64 = vector.broadcast %cst_24 : f32 to vector<4x8xf32>
    %65 = arith.mulf %63, %64 : vector<4x8xf32>
    %c0_25 = arith.constant 0 : index
    %c0_26 = arith.constant 0 : index
    %66 = vector.load %arg2[%c0_25, %c0_26] : memref<4x8xf32, #tpu.memory_space<vmem>>, vector<4x8xf32>
    %67 = arith.addf %65, %66 : vector<4x8xf32>
    %68 = vector.broadcast %42 : vector<4x1xi32> to vector<4x8xi32>
    %69 = arith.cmpi sle, %43, %68 : vector<4x8xi32>
    %cst_27 = arith.constant 0.000000e+00 : f32
    %cst_28 = arith.constant -1.000000e+09 : f32
    %70 = vector.broadcast %cst_27 : f32 to vector<4x8xf32>
    %71 = vector.broadcast %cst_28 : f32 to vector<4x8xf32>
    %72 = arith.select %69, %70, %71 : vector<4x8xi1>, vector<4x8xf32>
    %73 = arith.addf %67, %72 : vector<4x8xf32>
    %cst_29 = arith.constant dense<0xFF800000> : vector<4xf32>
    %74 = vector.multi_reduction <maximumf>, %73, %cst_29 [1] : vector<4x8xf32> to vector<4xf32>
    %75 = vector.shape_cast %74 : vector<4xf32> to vector<4x1xf32>
    %76 = vector.broadcast %75 : vector<4x1xf32> to vector<4x8xf32>
    %77 = arith.subf %73, %76 : vector<4x8xf32>
    %78 = math.exp %77 : vector<4x8xf32>
    %cst_30 = arith.constant dense<0.000000e+00> : vector<4xf32>
    %79 = vector.multi_reduction <add>, %78, %cst_30 [1] : vector<4x8xf32> to vector<4xf32>
    %80 = vector.shape_cast %79 : vector<4xf32> to vector<4x1xf32>
    %81 = tpu.reciprocal %80 {approx = true} : vector<4x1xf32> -> vector<4x1xf32>
    %82 = vector.broadcast %81 : vector<4x1xf32> to vector<4x8xf32>
    %83 = arith.mulf %78, %82 : vector<4x8xf32>
    %84 = vector.shape_cast %83 : vector<4x8xf32> to vector<4x8x1xf32>
    %85 = vector.broadcast %84 : vector<4x8x1xf32> to vector<4x8x32xf32>
    %86 = arith.mulf %85, %41 : vector<4x8x32xf32>
    %cst_31 = arith.constant dense<0.000000e+00> : vector<4x32xf32>
    %87 = vector.multi_reduction <add>, %86, %cst_31 [1] : vector<4x8x32xf32> to vector<4x32xf32>
    %88 = arith.truncf %87 : vector<4x32xf32> to vector<4x32xbf16>
    %c0_32 = arith.constant 0 : index
    %c0_33 = arith.constant 0 : index
    %89 = vector.load %arg10[%c0_32, %c0_33] : memref<32x32xbf16, #tpu.memory_space<vmem>>, vector<32x32xbf16>
    %cst_34 = arith.constant dense<0.000000e+00> : vector<4x32xf32>
    %90 = tpu.matmul %88, %89, %cst_34 {dimension_numbers = #tpu.dot_dimension_numbers<[1], [0], [0], [1], [0, 0, 1, 1], [], []>} : vector<4x32xbf16>, vector<32x32xbf16>, vector<4x32xf32> -> vector<4x32xf32>
    %c0_35 = arith.constant 0 : index
    %c0_36 = arith.constant 0 : index
    %91 = vector.load %arg11[%c0_35, %c0_36] : memref<1x32xf32, #tpu.memory_space<vmem>>, vector<1x32xf32>
    %92 = vector.shape_cast %91 : vector<1x32xf32> to vector<32xf32>
    %93 = vector.shape_cast %92 : vector<32xf32> to vector<1x32xf32>
    %94 = vector.broadcast %93 : vector<1x32xf32> to vector<4x32xf32>
    %95 = arith.addf %90, %94 : vector<4x32xf32>
    %96 = arith.addf %51, %95 : vector<4x32xf32>
    %c0_37 = arith.constant 0 : index
    %c0_38 = arith.constant 0 : index
    %97 = vector.load %arg12[%c0_37, %c0_38] : memref<1x32xf32, #tpu.memory_space<vmem>>, vector<1x32xf32>
    %98 = vector.shape_cast %97 : vector<1x32xf32> to vector<32xf32>
    %c0_39 = arith.constant 0 : index
    %c0_40 = arith.constant 0 : index
    %99 = vector.load %arg13[%c0_39, %c0_40] : memref<1x32xf32, #tpu.memory_space<vmem>>, vector<1x32xf32>
    %100 = vector.shape_cast %99 : vector<1x32xf32> to vector<32xf32>
    %cst_41 = arith.constant dense<0.000000e+00> : vector<4xf32>
    %101 = vector.multi_reduction <add>, %96, %cst_41 [1] : vector<4x32xf32> to vector<4xf32>
    %102 = vector.shape_cast %101 : vector<4xf32> to vector<4x1xf32>
    %cst_42 = arith.constant 3.200000e+01 : f32
    %103 = vector.broadcast %cst_42 : f32 to vector<4x1xf32>
    %104 = arith.divf %102, %103 : vector<4x1xf32>
    %105 = vector.broadcast %104 : vector<4x1xf32> to vector<4x32xf32>
    %106 = arith.subf %96, %105 : vector<4x32xf32>
    %107 = arith.mulf %106, %106 : vector<4x32xf32>
    %cst_43 = arith.constant dense<0.000000e+00> : vector<4xf32>
    %108 = vector.multi_reduction <add>, %107, %cst_43 [1] : vector<4x32xf32> to vector<4xf32>
    %109 = vector.shape_cast %108 : vector<4xf32> to vector<4x1xf32>
    %cst_44 = arith.constant 3.200000e+01 : f32
    %110 = vector.broadcast %cst_44 : f32 to vector<4x1xf32>
    %111 = arith.divf %109, %110 : vector<4x1xf32>
    %112 = vector.broadcast %104 : vector<4x1xf32> to vector<4x32xf32>
    %113 = arith.subf %96, %112 : vector<4x32xf32>
    %cst_45 = arith.constant 9.99999974E-6 : f32
    %114 = vector.broadcast %cst_45 : f32 to vector<4x1xf32>
    %115 = arith.addf %111, %114 : vector<4x1xf32>
    %116 = math.rsqrt %115 : vector<4x1xf32>
    %117 = vector.broadcast %116 : vector<4x1xf32> to vector<4x32xf32>
    %118 = arith.mulf %113, %117 : vector<4x32xf32>
    %119 = vector.shape_cast %98 : vector<32xf32> to vector<1x32xf32>
    %120 = vector.broadcast %119 : vector<1x32xf32> to vector<4x32xf32>
    %121 = arith.mulf %118, %120 : vector<4x32xf32>
    %122 = vector.shape_cast %100 : vector<32xf32> to vector<1x32xf32>
    %123 = vector.broadcast %122 : vector<1x32xf32> to vector<4x32xf32>
    %124 = arith.addf %121, %123 : vector<4x32xf32>
    %125 = arith.truncf %124 : vector<4x32xf32> to vector<4x32xbf16>
    %c0_46 = arith.constant 0 : index
    %c0_47 = arith.constant 0 : index
    %126 = vector.load %arg14[%c0_46, %c0_47] : memref<32x128xbf16, #tpu.memory_space<vmem>>, vector<32x128xbf16>
    %cst_48 = arith.constant dense<0.000000e+00> : vector<4x128xf32>
    %127 = tpu.matmul %125, %126, %cst_48 {dimension_numbers = #tpu.dot_dimension_numbers<[1], [0], [0], [1], [0, 0, 1, 1], [], []>} : vector<4x32xbf16>, vector<32x128xbf16>, vector<4x128xf32> -> vector<4x128xf32>
    %c0_49 = arith.constant 0 : index
    %c0_50 = arith.constant 0 : index
    %128 = vector.load %arg15[%c0_49, %c0_50] : memref<1x128xf32, #tpu.memory_space<vmem>>, vector<1x128xf32>
    %129 = vector.shape_cast %128 : vector<1x128xf32> to vector<128xf32>
    %130 = vector.shape_cast %129 : vector<128xf32> to vector<1x128xf32>
    %131 = vector.broadcast %130 : vector<1x128xf32> to vector<4x128xf32>
    %132 = arith.addf %127, %131 : vector<4x128xf32>
    %cst_51 = arith.constant 0.000000e+00 : f32
    %133 = vector.broadcast %cst_51 : f32 to vector<4x128xf32>
    %134 = arith.maximumf %132, %133 : vector<4x128xf32>
    %135 = arith.truncf %134 : vector<4x128xf32> to vector<4x128xbf16>
    %c0_52 = arith.constant 0 : index
    %c0_53 = arith.constant 0 : index
    %136 = vector.load %arg16[%c0_52, %c0_53] : memref<128x32xbf16, #tpu.memory_space<vmem>>, vector<128x32xbf16>
    %cst_54 = arith.constant dense<0.000000e+00> : vector<4x32xf32>
    %137 = tpu.matmul %135, %136, %cst_54 {dimension_numbers = #tpu.dot_dimension_numbers<[1], [0], [0], [1], [0, 0, 1, 1], [], []>} : vector<4x128xbf16>, vector<128x32xbf16>, vector<4x32xf32> -> vector<4x32xf32>
    %c0_55 = arith.constant 0 : index
    %c0_56 = arith.constant 0 : index
    %138 = vector.load %arg17[%c0_55, %c0_56] : memref<1x32xf32, #tpu.memory_space<vmem>>, vector<1x32xf32>
    %139 = vector.shape_cast %138 : vector<1x32xf32> to vector<32xf32>
    %140 = vector.shape_cast %139 : vector<32xf32> to vector<1x32xf32>
    %141 = vector.broadcast %140 : vector<1x32xf32> to vector<4x32xf32>
    %142 = arith.addf %137, %141 : vector<4x32xf32>
    %143 = arith.addf %124, %142 : vector<4x32xf32>
    %c0_57 = arith.constant 0 : index
    %c0_58 = arith.constant 0 : index
    %144 = vector.load %arg18[%c0_57, %c0_58] : memref<1x32xf32, #tpu.memory_space<vmem>>, vector<1x32xf32>
    %145 = vector.shape_cast %144 : vector<1x32xf32> to vector<32xf32>
    %c0_59 = arith.constant 0 : index
    %c0_60 = arith.constant 0 : index
    %146 = vector.load %arg19[%c0_59, %c0_60] : memref<1x32xf32, #tpu.memory_space<vmem>>, vector<1x32xf32>
    %147 = vector.shape_cast %146 : vector<1x32xf32> to vector<32xf32>
    %cst_61 = arith.constant dense<0.000000e+00> : vector<4xf32>
    %148 = vector.multi_reduction <add>, %143, %cst_61 [1] : vector<4x32xf32> to vector<4xf32>
    %149 = vector.shape_cast %148 : vector<4xf32> to vector<4x1xf32>
    %cst_62 = arith.constant 3.200000e+01 : f32
    %150 = vector.broadcast %cst_62 : f32 to vector<4x1xf32>
    %151 = arith.divf %149, %150 : vector<4x1xf32>
    %152 = vector.broadcast %151 : vector<4x1xf32> to vector<4x32xf32>
    %153 = arith.subf %143, %152 : vector<4x32xf32>
    %154 = arith.mulf %153, %153 : vector<4x32xf32>
    %cst_63 = arith.constant dense<0.000000e+00> : vector<4xf32>
    %155 = vector.multi_reduction <add>, %154, %cst_63 [1] : vector<4x32xf32> to vector<4xf32>
    %156 = vector.shape_cast %155 : vector<4xf32> to vector<4x1xf32>
    %cst_64 = arith.constant 3.200000e+01 : f32
    %157 = vector.broadcast %cst_64 : f32 to vector<4x1xf32>
    %158 = arith.divf %156, %157 : vector<4x1xf32>
    %159 = vector.broadcast %151 : vector<4x1xf32> to vector<4x32xf32>
    %160 = arith.subf %143, %159 : vector<4x32xf32>
    %cst_65 = arith.constant 9.99999974E-6 : f32
    %161 = vector.broadcast %cst_65 : f32 to vector<4x1xf32>
    %162 = arith.addf %158, %161 : vector<4x1xf32>
    %163 = math.rsqrt %162 : vector<4x1xf32>
    %164 = vector.broadcast %163 : vector<4x1xf32> to vector<4x32xf32>
    %165 = arith.mulf %160, %164 : vector<4x32xf32>
    %166 = vector.shape_cast %145 : vector<32xf32> to vector<1x32xf32>
    %167 = vector.broadcast %166 : vector<1x32xf32> to vector<4x32xf32>
    %168 = arith.mulf %165, %167 : vector<4x32xf32>
    %169 = vector.shape_cast %147 : vector<32xf32> to vector<1x32xf32>
    %170 = vector.broadcast %169 : vector<1x32xf32> to vector<4x32xf32>
    %171 = arith.addf %168, %170 : vector<4x32xf32>
    %c0_66 = arith.constant 0 : index
    %c0_67 = arith.constant 0 : index
    %172 = vector.load %arg20[%c0_66, %c0_67] : memref<4x32xf32, #tpu.memory_space<vmem>>, vector<4x32xf32>
    tpu.vector_store %arg20[%c0_66, %c0_67], %171 {strides = array<i32>} : memref<4x32xf32, #tpu.memory_space<vmem>>, vector<4x32xf32>,
    return
  }
  func.func @transform_0(%arg0: i32) -> (i32, i32, i32) {
    %c0_i32 = arith.constant 0 : i32
    %c0_i32_0 = arith.constant 0 : i32
    %c0_i32_1 = arith.constant 0 : i32
    return %arg0, %c0_i32, %c0_i32_0 : i32, i32, i32
  }
  func.func @transform_1(%arg0: i32) -> (i32, i32) {
    %c0_i32 = arith.constant 0 : i32
    %c0_i32_0 = arith.constant 0 : i32
    return %arg0, %c0_i32 : i32, i32
  }
  func.func @transform_2(%arg0: i32) -> (i32, i32) {
    %c0_i32 = arith.constant 0 : i32
    %c0_i32_0 = arith.constant 0 : i32
    return %arg0, %c0_i32 : i32, i32
  }
  func.func @transform_3(%arg0: i32) -> (i32, i32) {
    %c0_i32 = arith.constant 0 : i32
    %c0_i32_0 = arith.constant 0 : i32
    %c0_i32_1 = arith.constant 0 : i32
    return %c0_i32, %c0_i32_0 : i32, i32
  }
  func.func @transform_4(%arg0: i32) -> (i32, i32) {
    %c0_i32 = arith.constant 0 : i32
    %c0_i32_0 = arith.constant 0 : i32
    %c0_i32_1 = arith.constant 0 : i32
    return %c0_i32, %c0_i32_0 : i32, i32
  }
  func.func @transform_5(%arg0: i32) -> (i32, i32) {
    %c0_i32 = arith.constant 0 : i32
    %c0_i32_0 = arith.constant 0 : i32
    %c0_i32_1 = arith.constant 0 : i32
    return %c0_i32, %c0_i32_0 : i32, i32
  }
  func.func @transform_6(%arg0: i32) -> (i32, i32) {
    %c0_i32 = arith.constant 0 : i32
    %c0_i32_0 = arith.constant 0 : i32
    %c0_i32_1 = arith.constant 0 : i32
    return %c0_i32, %c0_i32_0 : i32, i32
  }
  func.func @transform_7(%arg0: i32) -> (i32, i32) {
    %c0_i32 = arith.constant 0 : i32
    %c0_i32_0 = arith.constant 0 : i32
    %c0_i32_1 = arith.constant 0 : i32
    return %c0_i32, %c0_i32_0 : i32, i32
  }
  func.func @transform_8(%arg0: i32) -> (i32, i32) {
    %c0_i32 = arith.constant 0 : i32
    %c0_i32_0 = arith.constant 0 : i32
    %c0_i32_1 = arith.constant 0 : i32
    return %c0_i32, %c0_i32_0 : i32, i32
  }
  func.func @transform_9(%arg0: i32) -> (i32, i32) {
    %c0_i32 = arith.constant 0 : i32
    %c0_i32_0 = arith.constant 0 : i32
    %c0_i32_1 = arith.constant 0 : i32
    return %c0_i32, %c0_i32_0 : i32, i32
  }
  func.func @transform_10(%arg0: i32) -> (i32, i32) {
    %c0_i32 = arith.constant 0 : i32
    %c0_i32_0 = arith.constant 0 : i32
    %c0_i32_1 = arith.constant 0 : i32
    return %c0_i32, %c0_i32_0 : i32, i32
  }
  func.func @transform_11(%arg0: i32) -> (i32, i32) {
    %c0_i32 = arith.constant 0 : i32
    %c0_i32_0 = arith.constant 0 : i32
    %c0_i32_1 = arith.constant 0 : i32
    return %c0_i32, %c0_i32_0 : i32, i32
  }
  func.func @transform_12(%arg0: i32) -> (i32, i32) {
    %c0_i32 = arith.constant 0 : i32
    %c0_i32_0 = arith.constant 0 : i32
    %c0_i32_1 = arith.constant 0 : i32
    return %c0_i32, %c0_i32_0 : i32, i32
  }
  func.func @transform_13(%arg0: i32) -> (i32, i32) {
    %c0_i32 = arith.constant 0 : i32
    %c0_i32_0 = arith.constant 0 : i32
    %c0_i32_1 = arith.constant 0 : i32
    return %c0_i32, %c0_i32_0 : i32, i32
  }
  func.func @transform_14(%arg0: i32) -> (i32, i32) {
    %c0_i32 = arith.constant 0 : i32
    %c0_i32_0 = arith.constant 0 : i32
    %c0_i32_1 = arith.constant 0 : i32
    return %c0_i32, %c0_i32_0 : i32, i32
  }
  func.func @transform_15(%arg0: i32) -> (i32, i32) {
    %c0_i32 = arith.constant 0 : i32
    %c0_i32_0 = arith.constant 0 : i32
    %c0_i32_1 = arith.constant 0 : i32
    return %c0_i32, %c0_i32_0 : i32, i32
  }
  func.func @transform_16(%arg0: i32) -> (i32, i32) {
    %c0_i32 = arith.constant 0 : i32
    %c0_i32_0 = arith.constant 0 : i32
    %c0_i32_1 = arith.constant 0 : i32
    return %c0_i32, %c0_i32_0 : i32, i32
  }
  func.func @transform_17(%arg0: i32) -> (i32, i32) {
    %c0_i32 = arith.constant 0 : i32
    %c0_i32_0 = arith.constant 0 : i32
    %c0_i32_1 = arith.constant 0 : i32
    return %c0_i32, %c0_i32_0 : i32, i32
  }
  func.func @transform_18(%arg0: i32) -> (i32, i32) {
    %c0_i32 = arith.constant 0 : i32
    %c0_i32_0 = arith.constant 0 : i32
    %c0_i32_1 = arith.constant 0 : i32
    return %c0_i32, %c0_i32_0 : i32, i32
  }
  func.func @transform_19(%arg0: i32) -> (i32, i32) {
    %c0_i32 = arith.constant 0 : i32
    %c0_i32_0 = arith.constant 0 : i32
    return %arg0, %c0_i32 : i32, i32
  }
}

</mosaic_0001>

<bundles_post_ra>
// kernel: tpu_custom_call.1
= control target key start
LH: loop header
LB: loop body
LE: loop exit
PB: predicated region body
PF: predicated region fallthrough
CT: control target
= control target key end

     0   :  { %s1793_s0 = inlined_call_operand.vmem [shape: bf16[4,8,32], index: 0, kind: input, shape index: {}]   ;;  %s1794_s1 = inlined_call_operand.vmem [shape: f32[4,8], index: 1, kind: input, shape index: {}]   ;;  %s1795_s2 = inlined_call_operand.vmem [shape: s32[4,1], index: 2, kind: input, shape index: {}]   ;;  %s1796_s3 = inlined_call_operand.vmem [shape: f32[1,32], index: 3, kind: input, shape index: {}]   ;;  %s1797_s4 = inlined_call_operand.vmem [shape: f32[1,32], index: 4, kind: input, shape index: {}]   ;;  %s1798_s5 = inlined_call_operand.vmem [shape: bf16[32,32], index: 5, kind: input, shape index: {}]   ;;  %s1799_s6 = inlined_call_operand.vmem [shape: f32[1,32], index: 6, kind: input, shape index: {}]   ;;  %s1800_s7 = inlined_call_operand.vmem [shape: bf16[32,64], index: 7, kind: input, shape index: {}]   ;;  %s1801_s8 = inlined_call_operand.vmem [shape: f32[1,64], index: 8, kind: input, shape index: {}]   ;;  %s1802_s9 = inlined_call_operand.vmem [shape: bf16[32,32], index: 9, kind: input, shape index: {}]   ;;  %s1803_s10 = inlined_call_operand.vmem [shape: f32[1,32], index: 10, kind: input, shape index: {}]   ;;  %s1804_s11 = inlined_call_operand.vmem [shape: f32[1,32], index: 11, kind: input, shape index: {}]   ;;  %s1805_s12 = inlined_call_operand.vmem [shape: f32[1,32], index: 12, kind: input, shape index: {}]   ;;  %s1806_s13 = inlined_call_operand.vmem [shape: bf16[32,128], index: 13, kind: input, shape index: {}]   ;;  %s1807_s14 = inlined_call_operand.vmem [shape: f32[1,128], index: 14, kind: input, shape index: {}]   ;;  %s1808_s15 = inlined_call_operand.vmem [shape: bf16[128,32], index: 15, kind: input, shape index: {}]   ;;  %s1809_s16 = inlined_call_operand.vmem [shape: f32[1,32], index: 16, kind: input, shape index: {}]   ;;  %s1810_s17 = inlined_call_operand.vmem [shape: f32[1,32], index: 17, kind: input, shape index: {}]   ;;  %s1811_s18 = inlined_call_operand.vmem [shape: f32[1,32], index: 18, kind: input, shape index: {}]   ;;  %s1812_s19 = inlined_call_operand.hbm [shape: f32[4,32], index: 19, kind: output, shape index: {}]  }
   0x1   :  { %1814 = sst [smem:[#allocation5_spill]] %s1793_s0 }
   0x2   :  { %1815 = sst [smem:[#allocation6_spill]] %s1794_s1 }
   0x3   :  { %1816 = sst [smem:[#allocation7_spill]] %s1795_s2 }
   0x4   :  { %1817 = sst [smem:[#allocation8_spill]] %s1796_s3 }
   0x5   :  { %s1818_s20 = sld [smem:[#allocation5_spill]]  ;;  %vm74_vm0 = vcmask 261120   ;;  %v1399_v4 = vmov 0  }
   0x6   :  { %1335 = vset.pattern.permute.xlu0 %v1399_v4  ;;  %1336 = vset.pattern.permute.xlu1 %v1399_v4 }
   0xb   :  { %v1246_v0 = vld [vmem:[%s1818_s20] sm:$0xff]   ;;  %v1253_v1 = vld [vmem:[%s1818_s20 + $0x8] sm:$0xff]  }
   0xc   :  { %v1247_v2 = vunpack.c.l.bf16 %v1246_v0  ;;  %v1248_v3 = vunpack.c.h.bf16 %v1246_v0  ;;  %v1251_v5 = vunpack.c.l.bf16 %v1253_v1  ;;  %v1252_v6 = vunpack.c.h.bf16 %v1253_v1 }
   0xe   :  { %v75_v7 = vsel %vm74_vm0, %v1247_v2, 0.0  ;;  %v78_v8 = vsel %vm74_vm0, %v1248_v3, 0.0  ;;  %v81_v9 = vsel %vm74_vm0, %v1251_v5, 0.0  ;;  %v84_v10 = vsel %vm74_vm0, %v1252_v6, 0.0 }
   0xf   :  { %76 = vadd.xlane.f32.xlu0 %v75_v7  ;;  %82 = vadd.xlane.f32.xlu1 %v81_v9 }
  0x13   :  { %79 = vadd.xlane.f32.xlu0 %v78_v8  ;;  %85 = vadd.xlane.f32.xlu1 %v84_v10 }
  0x14   :  { %24 = vsyncpa [#allocation3], 0  ;;  %v229_v11 = vlaneseq  ;;  %v1400_v13 = vmov 0.0   ;;  %s1819_s23 = sld [smem:[#allocation7_spill]]  ;;  %s1820_s3 = sld [smem:[#allocation6_spill]]  ;;  %v1337_v54 = vld [vmem:[%s1800_s7] sm:$0xff]  }
  0x15   :  { %1308 = vmatprep.subr.bf16.mxu0 %v1400_v13  ;;  %v1401_v24 = vmov -1e+09   ;;  %1276 = vmatprep.subr.bf16.mxu1 %v1337_v54  ;;  %v1338_v56 = vld [vmem:[%s1800_s7 + $0x8] sm:$0xff]   ;;  %vm1402_vm3 = vmmov 0   ;;  %s1821_s30 = sld [smem:[#allocation8_spill]]  ;;  %vm320_vm4 = vcmask 1041409  }
  0x16   :  { %v1516_v12 = vshrl.u32 %v229_v11, 7  ;;  %v1529_v20 = vand.u32 127, %v229_v11  ;;  %1277 = vmatpush3.bf16.msra.mxu1 %v1337_v54  ;;  %1324 = vmatprep.mubr.msk.bf16.mxu0 %vm1402_vm3, %v1400_v13  ;;  %v1213_v11 = vld [vmem:[%s1797_s4] ss:$0 sm:$0xff]  ;;  %vm322_vm5 = vcmask 1042434   ;;  %vm324_vm6 = vcmask 1043459  }
  0x17   :  { %1278 = vmatprep.subr.bf16.mxu1 %v1338_v56  ;;  %vm560_vm7 = vcmask 60416   ;;  %vm686_vm8 = vcmask 523520   ;;  %vm824_vm9 = vcmask 257024  }
  0x18   :  { %v1520_v14 = vsub.s32 1, %v1516_v12  ;;  %v1532_v21 = vsub.s32 0, %v1516_v12  ;;  %v1544_v29 = vsub.s32 2, %v1516_v12  ;;  %v1560_v49 = vsub.s32 3, %v1516_v12 }
  0x1a   :  { %v228_v15 = vld [vmem:[%s1819_s23] sm:$0xf]  ;;  %1279 = vmatpush3.bf16.msra.mxu1 %v1338_v56 }
  0x1b   :  { %v447_v16 = vld [vmem:[%s1820_s3] sm:$0xf]  ;;  %1284 = vmatprep.subr.bf16.mxu1 %v1400_v13 }
  0x1c   :  { %v459_v17 = vrot.slane %v447_v16, %v1520_v14  ;;  %v452_v51 = vrot.slane %v447_v16, %v1532_v21  ;;  %v466_v52 = vrot.slane %v447_v16, %v1544_v29  ;;  %v473_v53 = vrot.slane %v447_v16, %v1560_v49  ;;  %v1212_v9 = vld [vmem:[%s1821_s30] ss:$0 sm:$0xff]  ;;  %s1405_s30 = smov [#allocation2]  }
  0x1d   :  { %s1204_s20 = sshll.u32 %s1405_s30, 4  ;;  %s1205_s20 = int_to_ptr.vmem [resolvable:$true] %s1204_s20 }
  0x1e   :  { %p1380_p1 = scmp.lt.s32.totalorder %s1205_s20, %s1205_s20 }
  0x29   :  { %232 = vperm.xlu0 %1335, %v228_v15  }
  0x2d   :  { %461 = vbcast.lane.b32.xlu0 %v459_v17, 256 }
  0x9c   :  { %v77_v18 = vpop.xlane.xlu0 %76  ;;  %v83_v32 = vpop.xlane.xlu1 %82 }
  0x9d   :  { %v88_v31 = vmul.f32 0.03125, %v77_v18  ;;  %v90_v35 = vmul.f32 0.03125, %v83_v32 }
  0x9f   :  { %v92_v33 = vsub.f32 %v1247_v2, %v88_v31  ;;  %v1547_v39 = vsub.f32 %v1251_v5, %v90_v35 }
  0xa0   :  { %v80_v19 = vpop.xlane.xlu0 %79  ;;  %v86_v36 = vpop.xlane.xlu1 %85 }
  0xa1   :  { %v89_v34 = vmul.f32 0.03125, %v80_v19  ;;  %v96_v38 = vmul.f32 %v92_v33, %v92_v33  ;;  %v91_v40 = vmul.f32 0.03125, %v86_v36  ;;  %v98_v44 = vmul.f32 %v1547_v39, %v1547_v39 }
  0xa3   :  { %v93_v37 = vsub.f32 %v1248_v3, %v89_v34  ;;  %v100_v41 = vsel %vm74_vm0, %v96_v38, 0.0  ;;  %v1550_v43 = vsub.f32 %v1252_v6, %v91_v40  ;;  %v106_v46 = vsel %vm74_vm0, %v98_v44, 0.0 }
  0xa5   :  { %v97_v42 = vmul.f32 %v93_v37, %v93_v37  ;;  %v99_v47 = vmul.f32 %v1550_v43, %v1550_v43 }
  0xa7   :  { %v103_v45 = vsel %vm74_vm0, %v97_v42, 0.0  ;;  %v109_v48 = vsel %vm74_vm0, %v99_v47, 0.0 }
  0xa8   :  { %v233_v22 = vpop.permute.xlu0 %232 }
  0xa9   :  { %vm234_vm1 = vcmp.eq.s32.totalorder %v1529_v20, %v233_v22  ;;  %vm485_vm2 = vcmp.le.s32.totalorder %v1529_v20, %v233_v22 }
  0xaa   :  { %v1219_v23 = vsel %vm234_vm1, 1.0, %v1400_v13  ;;  %v1537_v25 = vsel %vm485_vm2, 0.0, %v1401_v24 }
  0xab   :  { %v491_v26 = vrot.slane %v1537_v25, %v1532_v21  ;;  %v240_v27 = vrot.slane %v1219_v23, %v1532_v21  ;;  %v247_v28 = vrot.slane %v1219_v23, %v1520_v14  ;;  %v254_v30 = vrot.slane %v1219_v23, %v1544_v29 }
  0xac   :  { %v261_v50 = vrot.slane %v1219_v23, %v1560_v49  ;;  %v498_v55 = vrot.slane %v1537_v25, %v1520_v14 }
  0xad   :  { %493 = vbcast.lane.b32.xlu0 %v491_v26, 256  ;;  %242 = vbcast.lane.b32.xlu1 %v240_v27, 256 }
  0xb1   :  { %249 = vbcast.lane.b32.xlu1 %v247_v28, 256 }
  0xb5   :  { %256 = vbcast.lane.b32.xlu1 %v254_v30, 256 }
  0xd9   :  { %101 = vadd.xlane.f32.xlu1 %v100_v41 }
  0xdd   :  { %104 = vadd.xlane.f32.xlu1 %v103_v45 }
  0xe1   :  { %107 = vadd.xlane.f32.xlu1 %v106_v46 }
  0xe5   :  { %110 = vadd.xlane.f32.xlu1 %v109_v48 }
  0xf6   :  { %263 = vbcast.lane.b32.xlu1 %v261_v50, 256 }
  0xfa   :  { %454 = vbcast.lane.b32.xlu1 %v452_v51, 256 }
  0xfe   :  { %468 = vbcast.lane.b32.xlu1 %v466_v52, 256 }
 0x102   :  { %475 = vbcast.lane.b32.xlu1 %v473_v53, 256 }
 0x106   :  { %500 = vbcast.lane.b32.xlu1 %v498_v55, 256 }
 0x11f   :  { %v243_v57 = vpop.permute.xlu1 %242 }
 0x123   :  { %v250_v58 = vpop.permute.xlu1 %249 }
 0x127   :  { %v257_v59 = vpop.permute.xlu1 %256 }
 0x166   :  { %v102_v60 = vpop.xlane.xlu1 %101 }
 0x167   :  { %v112_v61 = vmul.f32 0.03125, %v102_v60  ;;  %v1340_v60 = vld [vmem:[%s1798_s5 + $0x8] sm:$0xff]  }
 0x169   :  { %v116_v62 = vadd.f32 1e-05, %v112_v61 }
 0x16a   :  { %v105_v63 = vpop.xlane.xlu1 %104 }
 0x16b   :  { %1353 = vrsqrt.f32 %v116_v62  ;;  %v113_v0 = vmul.f32 0.03125, %v105_v63 }
 0x16d   :  { %v117_v1 = vadd.f32 1e-05, %v113_v0 }
 0x16e   :  { %v108_v2 = vpop.xlane.xlu1 %107 }
 0x16f   :  { %1355 = vrsqrt.f32 %v117_v1  ;;  %v114_v3 = vmul.f32 0.03125, %v108_v2 }
 0x171   :  { %v118_v4 = vadd.f32 1e-05, %v114_v3 }
 0x172   :  { %v111_v5 = vpop.xlane.xlu1 %110 }
 0x173   :  { %1357 = vrsqrt.f32 %v118_v4  ;;  %v115_v6 = vmul.f32 0.03125, %v111_v5 }
 0x175   :  { %v1354_v7 = vpop.eup %1353  ;;  %v119_v8 = vadd.f32 1e-05, %v115_v6 }
 0x176   :  { %v124_v10 = vmul.f32 %v1354_v7, %v92_v33  ;;  %v264_v47 = vpop.permute.xlu1 %263 }
 0x177   :  { %1359 = vrsqrt.f32 %v119_v8 }
 0x178   :  { %v134_v15 = vmul.f32 %v1212_v9, %v124_v10 }
 0x179   :  { %v1356_v16 = vpop.eup %1355 }
 0x17a   :  { %v125_v17 = vmul.f32 %v1356_v16, %v93_v37  ;;  %v144_v18 = vadd.f32 %v1213_v11, %v134_v15 }
 0x17c   :  { %v135_v19 = vmul.f32 %v1212_v9, %v125_v17  ;;  %v265_v22 = vmul.f32 %v243_v57, %v144_v18 }
 0x17d   :  { %v1358_v23 = vpop.eup %1357 }
 0x17e   :  { %v126_v24 = vmul.f32 %v1358_v23, %v1547_v39  ;;  %v145_v26 = vadd.f32 %v1213_v11, %v135_v19  ;;  %v269_v27 = vsel %vm74_vm0, %v265_v22, 0.0 }
 0x17f   :  { %v270_v28 = vrot.slane %v269_v27, 4 }
 0x180   :  { %v136_v30 = vmul.f32 %v1212_v9, %v126_v24  ;;  %v148_v31 = vpack.c.bf16 %v145_v26, %v144_v18  ;;  %v266_v32 = vmul.f32 %v250_v58, %v145_v26 }
 0x181   :  { %v1360_v33 = vpop.eup %1359  ;;  %v271_v34 = vadd.f32 %v270_v28, %v269_v27 }
 0x182   :  { %v127_v35 = vmul.f32 %v1360_v33, %v1550_v43  ;;  %v146_v36 = vadd.f32 %v1213_v11, %v136_v30  ;;  %1280 = vmatprep.mubr.msk.bf16.mxu1 %vm74_vm0, %v148_v31  ;;  %v276_v37 = vsel %vm74_vm0, %v266_v32, 0.0  ;;  %v1339_v43 = vld [vmem:[%s1798_s5] sm:$0xff]   ;;  %v1403_v30 = vmov 1966171168  }
 0x183   :  { %v272_v38 = vrot.slane %v271_v34, 2  ;;  %v277_v40 = vrot.slane %v276_v37, 4  ;;  %v384_v31 = vunpack.c.l.s4 %v1403_v30  ;;  %v1220_v33 = vld [vmem:[%s1799_s6] ss:$0 sm:$0xff] }
 0x184   :  { %v137_v41 = vmul.f32 %v1212_v9, %v127_v35  ;;  %v267_v39 = vmul.f32 %v257_v59, %v146_v36 }
 0x185   :  { %v278_v42 = vadd.f32 %v277_v40, %v276_v37  ;;  %v273_v48 = vadd.f32 %v272_v38, %v271_v34  ;;  %v385_v32 = vunpack.c.0.s8 %v384_v31 }
 0x186   :  { %v147_v44 = vadd.f32 %v1213_v11, %v137_v41  ;;  %v283_v45 = vsel %vm74_vm0, %v267_v39, 0.0  ;;  %v1214_v39 = vld [vmem:[%s1801_s8] ss:$0 sm:$0xff] }
 0x187   :  { %v284_v46 = vrot.slane %v283_v45, 4  ;;  %v279_v50 = vrot.slane %v278_v42, 2  ;;  %v274_v58 = vrot.slane %v273_v48, 1  ;;  %v388_v34 = vsub.s32 %v385_v32, %v1516_v12 }
 0x188   :  { %v149_v51 = vpack.c.bf16 %v147_v44, %v146_v36  ;;  %v268_v52 = vmul.f32 %v264_v47, %v147_v44 }
 0x189   :  { %v285_v53 = vadd.f32 %v284_v46, %v283_v45  ;;  %v280_v54 = vadd.f32 %v279_v50, %v278_v42  ;;  %v1602_v2 = vadd.f32 %v274_v58, %v273_v48 }
 0x18a   :  { %v290_v55 = vsel %vm74_vm0, %v268_v52, 0.0  ;;  %1281 = vmatmul.mubr.msk.bf16.vlgmr.msra.gmra.mrb[0].mxu1 %vm74_vm0, %v149_v51 }
 0x18b   :  { %v286_v56 = vrot.slane %v285_v53, 2  ;;  %v291_v57 = vrot.slane %v290_v55, 4  ;;  %v281_v59 = vrot.slane %v280_v54, 1  ;;  %1285 = vmatpush3.bf16.msra.mxu1 %v1339_v43  ;;  %1288 = vmatprep.mubr.msk.bf16.mxu1 %vm1402_vm3, %v1400_v13  ;;  %v297_v8 = vpack.c.bf16 %v1602_v2, %v1602_v2 }
 0x18c   :  { %1286 = vmatprep.subr.bf16.mxu1 %v1400_v13 }
 0x18d   :  { %v287_v61 = vadd.f32 %v286_v56, %v285_v53  ;;  %v292_v62 = vadd.f32 %v291_v57, %v290_v55  ;;  %v1600_v63 = vadd.f32 %v281_v59, %v280_v54  ;;  %v316_v16 = vunpack.c.l.b16 %v297_v8 }
 0x18f   :  { %v288_v0 = vrot.slane %v287_v61, 1  ;;  %v293_v1 = vrot.slane %v292_v62, 2  ;;  %1287 = vmatpush3.bf16.msra.mxu1 %v1340_v60  ;;  %v298_v5 = vpack.c.bf16 %v1600_v63, %v1600_v63 }
 0x190   :  { %1292 = vmatprep.subr.bf16.mxu1 %v1400_v13 }
 0x191   :  { %v1605_v3 = vadd.f32 %v288_v0, %v287_v61  ;;  %v294_v4 = vadd.f32 %v293_v1, %v292_v62  ;;  %v317_v10 = vunpack.c.l.b16 %v298_v5  ;;  %v512_v1 = vrot.slane %v1537_v25, %v1560_v49  ;;  %v455_v5 = vpop.permute.xlu1 %454 }
 0x193   :  { %v299_v6 = vpack.c.bf16 %v1605_v3, %v1605_v3  ;;  %v295_v7 = vrot.slane %v294_v4, 1  ;;  %v321_v18 = vsel %vm320_vm4, %v317_v10, %v316_v16 }
 0x195   :  { %v1613_v9 = vadd.f32 %v295_v7, %v294_v4  ;;  %v318_v11 = vunpack.c.l.b16 %v299_v6  ;;  %v505_v4 = vrot.slane %v1537_v25, %v1544_v29  ;;  %v469_v6 = vpop.permute.xlu1 %468  ;;  %v462_v7 = vpop.permute.xlu0 %461 }
 0x197   :  { %v300_v15 = vpack.c.bf16 %v1613_v9, %v1613_v9  ;;  %v323_v19 = vsel %vm322_vm5, %v318_v11, %v321_v18 }
 0x199   :  { %v319_v17 = vunpack.c.l.b16 %v300_v15  ;;  %v476_v8 = vpop.permute.xlu1 %475  ;;  %v494_v10 = vpop.permute.xlu0 %493 }
 0x19b   :  { %v325_v22 = vsel %vm324_vm6, %v319_v17, %v323_v19 }
 0x19c   :  { %v326_v23 = vpack.c.b16 %v325_v22, %v325_v22 }
 0x19d   :  { %v501_v11 = vpop.permute.xlu1 %500 }
 0x19e   :  { %1289 = vmatmul.mubr.msk.bf16.vlgmr.msra.gmra.mrb[4].mxu1 %vm74_vm0, %v326_v23 }
 0x19f   :  { %1296 = vmatprep.mubr.msk.bf16.mxu1 %vm1402_vm3, %v1400_v13 }
 0x25d   :  { %v1282_v24 = vpop.f32.mrb[0].mxu1 }
 0x25e   :  { %v213_v26 = vpop.f32.mrb[1].mxu1  ;;  %v1633_v50 = vadd.f32 %v1282_v24, %v1214_v39 }
 0x25f   :  { %v1283_v27 = vpop.f32.mrb[2].mxu1  ;;  %v1630_v45 = vadd.f32 %v1214_v39, %v213_v26 }
 0x260   :  { %v216_v28 = vpop.f32.mrb[3].mxu1  ;;  %v1644_v59 = vadd.f32 %v1283_v27, %v1214_v39 }
 0x261   :  { %v1635_v43 = vadd.f32 %v1214_v39, %v216_v28 }
 0x271   :  { %v376_v35 = vpop.f32.mrb[4].mxu1 }
 0x272   :  { %v377_v36 = vadd.f32 %v1220_v33, %v376_v35  ;;  %v1290_v37 = vpop.f32.mrb[5].mxu1 }
 0x273   :  { %v379_v38 = vpop.f32.mrb[6].mxu1  ;;  %v542_v37 = vsub.s32 %v1529_v20, %v1516_v12 }
 0x274   :  { %v389_v40 = vrot.slane %v377_v36, %v388_v34  ;;  %v1291_v41 = vpop.f32.mrb[7].mxu1 }
 0x276   :  { %v390_v42 = vcombine.high %v389_v40, %v389_v40  ;;  %v397_v44 = vrot.slane %v389_v40, %v388_v34 }
 0x278   :  { %v410_v46 = vrot.slane %v397_v44, %v1532_v21  ;;  %v404_v47 = vrot.slane %v390_v42, %v388_v34  ;;  %v405_v48 = vcombine.high %v397_v44, %v397_v44 }
 0x27a   :  { %v427_v51 = vmul.f32 %v410_v46, %v1630_v45  ;;  %v414_v52 = vrot.slane %v404_v47, %v1532_v21  ;;  %v418_v53 = vrot.slane %v405_v48, %v1532_v21  ;;  %v406_v54 = vcombine.high %v404_v47, %v404_v47 }
 0x27c   :  { %v431_v55 = vsel %vm74_vm0, %v427_v51, 0.0  ;;  %v428_v56 = vmul.f32 %v414_v52, %v1635_v43  ;;  %v429_v57 = vmul.f32 %v418_v53, %v1633_v50  ;;  %v422_v58 = vrot.slane %v406_v54, %v1532_v21 }
 0x27d   :  { %432 = vadd.xlane.f32.xlu0 %v431_v55 }
 0x27e   :  { %v434_v60 = vsel %vm74_vm0, %v428_v56, 0.0  ;;  %v437_v61 = vsel %vm74_vm0, %v429_v57, 0.0  ;;  %v430_v62 = vmul.f32 %v422_v58, %v1644_v59 }
 0x27f   :  { %435 = vadd.xlane.f32.xlu1 %v434_v60 }
 0x280   :  { %v440_v0 = vsel %vm74_vm0, %v430_v62, 0.0 }
 0x281   :  { %438 = vadd.xlane.f32.xlu0 %v437_v61 }
 0x285   :  { %441 = vadd.xlane.f32.xlu0 %v440_v0 }
 0x290   :  { %514 = vbcast.lane.b32.xlu1 %v512_v1, 256 }
 0x29b   :  { %507 = vbcast.lane.b32.xlu0 %v505_v4, 256 }
 0x30a   :  { %v433_v15 = vpop.xlane.xlu0 %432 }
 0x30b   :  { %v443_v16 = vmul.f32 0.17677669, %v433_v15 }
 0x30c   :  { %v436_v17 = vpop.xlane.xlu1 %435 }
 0x30d   :  { %v481_v18 = vadd.f32 %v455_v5, %v443_v16  ;;  %v444_v19 = vmul.f32 0.17677669, %v436_v17 }
 0x30e   :  { %v439_v22 = vpop.xlane.xlu0 %438 }
 0x30f   :  { %v482_v23 = vadd.f32 %v462_v7, %v444_v19  ;;  %v520_v24 = vadd.f32 %v494_v10, %v481_v18  ;;  %v445_v26 = vmul.f32 0.17677669, %v439_v22 }
 0x310   :  { %v515_v32 = vpop.permute.xlu1 %514 }
 0x311   :  { %529 = vperm.xlu0 %1335, %v520_v24   ;;  %v521_v27 = vadd.f32 %v501_v11, %v482_v23  ;;  %v483_v31 = vadd.f32 %v469_v6, %v445_v26 }
 0x312   :  { %v442_v28 = vpop.xlane.xlu0 %441 }
 0x313   :  { %v446_v25 = vmul.f32 0.17677669, %v442_v28  ;;  %532 = vperm.xlu1 %1336, %v521_v27  }
 0x315   :  { %v484_v30 = vadd.f32 %v476_v8, %v446_v25 }
 0x316   :  { %v508_v33 = vpop.permute.xlu0 %507 }
 0x317   :  { %v522_v34 = vadd.f32 %v508_v33, %v483_v31  ;;  %v523_v35 = vadd.f32 %v515_v32, %v484_v30 }
 0x319   :  { %538 = vperm.xlu1 %1336, %v523_v35   ;;  %535 = vperm.xlu0 %1335, %v522_v34  }
 0x390   :  { %v530_v38 = vpop.permute.xlu0 %529 }
 0x391   :  { %v543_v41 = vrot.slane %v530_v38, %v542_v37 }
 0x392   :  { %v533_v36 = vpop.permute.xlu1 %532 }
 0x393   :  { %v547_v40 = vrot.slane %v533_v36, %v542_v37 }
 0x395   :  { %v556_v47 = vsel %vm320_vm4, %v547_v40, %v543_v41 }
 0x398   :  { %v539_v39 = vpop.permute.xlu1 %538  ;;  %v536_v42 = vpop.permute.xlu0 %535 }
 0x399   :  { %v555_v44 = vrot.slane %v539_v39, %v542_v37  ;;  %v551_v46 = vrot.slane %v536_v42, %v542_v37 }
 0x39b   :  { %v557_v48 = vsel %vm322_vm5, %v551_v46, %v556_v47 }
 0x39c   :  { %v558_v51 = vsel %vm324_vm6, %v555_v44, %v557_v48 }
 0x39d   :  { %v561_v52 = vsel %vm560_vm7, %v558_v51, -inf }
 0x39e   :  { %562 = vmax.xlane.f32.xlu0 %v561_v52 }
 0x42b   :  { %v563_v53 = vpop.xlane.xlu0 %562 }
 0x42c   :  { %v568_v12 = vrot.slane %v563_v53, %v1532_v21  ;;  %v572_v20 = vrot.slane %v563_v53, %v1520_v14  ;;  %v576_v54 = vrot.slane %v563_v53, %v1544_v29  ;;  %v580_v58 = vrot.slane %v563_v53, %v1560_v49 }
 0x42e   :  { %v585_v55 = vsub.f32 %v520_v24, %v568_v12  ;;  %v586_v56 = vsub.f32 %v521_v27, %v572_v20  ;;  %v587_v60 = vsub.f32 %v522_v34, %v576_v54  ;;  %v588_v62 = vsub.f32 %v523_v35, %v580_v58 }
 0x430   :  { %v589_v57 = vmul.f32 1.442695, %v585_v55  ;;  %v591_v61 = vmul.f32 1.442695, %v586_v56  ;;  %v593_v0 = vmul.f32 1.442695, %v587_v60 }
 0x431   :  { %v595_v1 = vmul.f32 1.442695, %v588_v62 }
 0x432   :  { %1361 = vpow2.f32 %v589_v57 }
 0x433   :  { %1363 = vpow2.f32 %v591_v61 }
 0x434   :  { %1365 = vpow2.f32 %v593_v0 }
 0x435   :  { %1367 = vpow2.f32 %v595_v1 }
 0x43c   :  { %v1362_v4 = vpop.eup %1361 }
 0x43d   :  { %602 = vperm.xlu1 %1336, %v1362_v4   ;;  %v1364_v5 = vpop.eup %1363 }
 0x43e   :  { %v1366_v6 = vpop.eup %1365 }
 0x43f   :  { %v1368_v7 = vpop.eup %1367 }
 0x441   :  { %605 = vperm.xlu1 %1336, %v1364_v5  }
 0x445   :  { %608 = vperm.xlu1 %1336, %v1366_v6  }
 0x449   :  { %611 = vperm.xlu1 %1336, %v1368_v7  }
 0x4bc   :  { %v603_v8 = vpop.permute.xlu1 %602 }
 0x4bd   :  { %v616_v17 = vrot.slane %v603_v8, %v542_v37 }
 0x4c0   :  { %v606_v10 = vpop.permute.xlu1 %605 }
 0x4c1   :  { %v620_v15 = vrot.slane %v606_v10, %v542_v37 }
 0x4c3   :  { %v629_v19 = vsel %vm320_vm4, %v620_v15, %v616_v17 }
 0x4c4   :  { %v609_v11 = vpop.permute.xlu1 %608 }
 0x4c5   :  { %v624_v16 = vrot.slane %v609_v11, %v542_v37 }
 0x4c7   :  { %v630_v23 = vsel %vm322_vm5, %v624_v16, %v629_v19 }
 0x4c8   :  { %v612_v18 = vpop.permute.xlu1 %611 }
 0x4c9   :  { %v628_v22 = vrot.slane %v612_v18, %v542_v37  ;;  %v1341_v37 = vld [vmem:[%s1802_s9] sm:$0xff]  }
 0x4ca   :  { %1293 = vmatpush3.bf16.msra.mxu1 %v1341_v37 }
 0x4cb   :  { %v631_v24 = vsel %vm324_vm6, %v628_v22, %v630_v23  ;;  %1294 = vmatprep.subr.bf16.mxu1 %v1400_v13 }
 0x4cc   :  { %v633_v26 = vsel %vm560_vm7, %v631_v24, 0.0 }
 0x4cd   :  { %634 = vadd.xlane.f32.xlu1 %v633_v26 }
 0x55a   :  { %v635_v27 = vpop.xlane.xlu1 %634 }
 0x55b   :  { %1369 = vrcp.f32 %v635_v27 }
 0x565   :  { %v1370_v28 = vpop.eup %1369 }
 0x566   :  { %v649_v25 = vrot.slane %v1370_v28, %v1544_v29  ;;  %v641_v30 = vrot.slane %v1370_v28, %v1532_v21  ;;  %v645_v33 = vrot.slane %v1370_v28, %v1520_v14  ;;  %v653_v35 = vrot.slane %v1370_v28, %v1560_v49  ;;  %v1342_v21 = vld [vmem:[%s1802_s9 + $0x8] sm:$0xff]   ;;  %s1404_s9 = smov 96  }
 0x567   :  { %1295 = vmatpush3.bf16.msra.mxu1 %v1342_v21 }
 0x568   :  { %v660_v31 = vmul.f32 %v1366_v6, %v649_v25  ;;  %v658_v32 = vmul.f32 %v1362_v4, %v641_v30  ;;  %v659_v34 = vmul.f32 %v1364_v5, %v645_v33  ;;  %v661_v36 = vmul.f32 %v1368_v7, %v653_v35  ;;  %1300 = vmatprep.subr.bf16.mxu1 %v1400_v13  ;;  %v1224_v25 = vld [vmem:[%s1803_s10] ss:$0 sm:$0xff] }
 0x56a   :  { %674 = vperm.xlu1 %1336, %v660_v31   ;;  %664 = vperm.xlu0 %1335, %v658_v32  }
 0x56e   :  { %669 = vperm.xlu0 %1335, %v659_v34  }
 0x572   :  { %679 = vperm.xlu0 %1335, %v661_v36  }
 0x5e9   :  { %v675_v14 = vpop.permute.xlu1 %674  ;;  %v665_v29 = vpop.permute.xlu0 %664 }
 0x5ea   :  { %v684_v49 = vmul.f32 %v675_v14, %v1633_v50  ;;  %v682_v38 = vmul.f32 %v665_v29, %v1630_v45 }
 0x5ec   :  { %v701_v40 = vsel %vm686_vm8, %v684_v49, 0.0  ;;  %v687_v41 = vsel %vm686_vm8, %v682_v38, 0.0 }
 0x5ed   :  { %v702_v39 = vrot.slane %v701_v40, 4  ;;  %v688_v42 = vrot.slane %v687_v41, 4  ;;  %v670_v44 = vpop.permute.xlu0 %669 }
 0x5ee   :  { %v683_v46 = vmul.f32 %v670_v44, %v1635_v43 }
 0x5ef   :  { %v703_v47 = vadd.f32 %v702_v39, %v701_v40  ;;  %v689_v48 = vadd.f32 %v688_v42, %v687_v41 }
 0x5f0   :  { %v694_v51 = vsel %vm686_vm8, %v683_v46, 0.0 }
 0x5f1   :  { %v704_v52 = vrot.slane %v703_v47, 2  ;;  %v690_v53 = vrot.slane %v689_v48, 2  ;;  %v695_v12 = vrot.slane %v694_v51, 4  ;;  %v680_v20 = vpop.permute.xlu0 %679 }
 0x5f2   :  { %v685_v50 = vmul.f32 %v680_v20, %v1644_v59 }
 0x5f3   :  { %v705_v45 = vadd.f32 %v704_v52, %v703_v47  ;;  %v691_v54 = vadd.f32 %v690_v53, %v689_v48  ;;  %v696_v55 = vadd.f32 %v695_v12, %v694_v51 }
 0x5f4   :  { %v708_v56 = vsel %vm686_vm8, %v685_v50, 0.0 }
 0x5f5   :  { %v692_v57 = vrot.slane %v691_v54, 1  ;;  %v697_v58 = vrot.slane %v696_v55, 2  ;;  %v709_v60 = vrot.slane %v708_v56, 4  ;;  %v706_v61 = vrot.slane %v705_v45, 1 }
 0x5f7   :  { %v693_v43 = vadd.f32 %v692_v57, %v691_v54  ;;  %v698_v62 = vadd.f32 %v697_v58, %v696_v55  ;;  %v710_v0 = vadd.f32 %v709_v60, %v708_v56  ;;  %v707_v5 = vadd.f32 %v706_v61, %v705_v45 }
 0x5f9   :  { %v699_v1 = vrot.slane %v698_v62, 1  ;;  %v711_v4 = vrot.slane %v710_v0, 2  ;;  %v715_v6 = vpack.c.bf16 %v693_v43, %v693_v43  ;;  %v717_v11 = vpack.c.bf16 %v707_v5, %v707_v5  ;;  %v1343_v43 = vld [vmem:[%s1806_s13] sm:$0xff]   ;;  %v1348_v5 = vld [vmem:[%s1808_s15 + $0x18] sm:$0xff]  }
 0x5fb   :  { %v700_v7 = vadd.f32 %v699_v1, %v698_v62  ;;  %v712_v8 = vadd.f32 %v711_v4, %v710_v0  ;;  %v734_v15 = vunpack.c.l.b16 %v715_v6  ;;  %v736_v22 = vunpack.c.l.b16 %v717_v11  ;;  %v1344_v62 = vld [vmem:[%s1806_s13 + $0x8] sm:$0xff]   ;;  %v1345_v0 = vld [vmem:[%s1808_s15] sm:$0xff]   ;;  %v1347_v4 = vld [vmem:[%s1808_s15 + $0x10] sm:$0xff]  }
 0x5fc   :  { %1309 = vmatpush3.bf16.msra.mxu0 %v1345_v0  ;;  %v1346_v1 = vld [vmem:[%s1808_s15 + $0x8] sm:$0xff]   ;;  %v1349_v6 = vld [vmem:[%s1808_s15 + $0x20] sm:$0xff]  }
 0x5fd   :  { %v716_v10 = vpack.c.bf16 %v700_v7, %v700_v7  ;;  %v713_v59 = vrot.slane %v712_v8, 1  ;;  %1310 = vmatprep.subr.bf16.mxu0 %v1400_v13  ;;  %v1350_v7 = vld [vmem:[%s1808_s15 + $0x28] sm:$0xff]  }
 0x5ff   :  { %v735_v16 = vunpack.c.l.b16 %v716_v10  ;;  %v714_v17 = vadd.f32 %v713_v59, %v712_v8 }
 0x600   :  { %1311 = vmatpush3.bf16.msra.mxu0 %v1346_v1 }
 0x601   :  { %v718_v18 = vpack.c.bf16 %v714_v17, %v714_v17  ;;  %v738_v19 = vsel %vm320_vm4, %v735_v16, %v734_v15  ;;  %1312 = vmatprep.subr.bf16.mxu0 %v1400_v13  ;;  %v1228_v15 = vld [vmem:[%s1804_s11] ss:$0 sm:$0xff] }
 0x602   :  { %v739_v24 = vsel %vm322_vm5, %v736_v22, %v738_v19  ;;  %v1229_v22 = vld [vmem:[%s1805_s12] ss:$0 sm:$0xff] }
 0x603   :  { %v737_v23 = vunpack.c.l.b16 %v718_v18 }
 0x604   :  { %1313 = vmatpush3.bf16.msra.mxu0 %v1347_v4 }
 0x605   :  { %v740_v26 = vsel %vm324_vm6, %v737_v23, %v739_v24  ;;  %1314 = vmatprep.subr.bf16.mxu0 %v1400_v13 }
 0x606   :  { %v741_v27 = vpack.c.b16 %v740_v26, %v740_v26 }
 0x608   :  { %742 = vrot.lane.b32.xlu0 %v741_v27, %s1404_s9  ;;  %1315 = vmatpush3.bf16.msra.mxu0 %v1348_v5 }
 0x609   :  { %1316 = vmatprep.subr.bf16.mxu0 %v1400_v13 }
 0x60c   :  { %1317 = vmatpush3.bf16.msra.mxu0 %v1349_v6 }
 0x60d   :  { %1318 = vmatprep.subr.bf16.mxu0 %v1400_v13 }
 0x610   :  { %1319 = vmatpush3.bf16.msra.mxu0 %v1350_v7 }
 0x611   :  { %1320 = vmatprep.subr.bf16.mxu0 %v1400_v13 }
 0x67a   :  { %v743_v28 = vpop.permute.xlu0 %742 }
 0x67b   :  { %1297 = vmatmul.mubr.msk.bf16.vlgmr.msra.gmra.mrb[8].mxu1 %vm74_vm0, %v743_v28 }
 0x67c   :  { %1304 = vmatprep.mubr.msk.bf16.mxu1 %vm1402_vm3, %v1400_v13  ;;  %1301 = vmatpush3.bf16.msra.mxu1 %v1343_v43 }
 0x67d   :  { %1302 = vmatprep.subr.bf16.mxu1 %v1400_v13 }
 0x680   :  { %1303 = vmatpush3.bf16.msra.mxu1 %v1344_v62 }
 0x74e   :  { %v793_v30 = vpop.f32.mrb[8].mxu1 }
 0x74f   :  { %v794_v31 = vadd.f32 %v1224_v25, %v793_v30  ;;  %v1298_v32 = vpop.f32.mrb[9].mxu1 }
 0x750   :  { %v796_v33 = vpop.f32.mrb[10].mxu1 }
 0x751   :  { %v800_v34 = vrot.slane %v794_v31, 1  ;;  %v801_v35 = vrot.slane %v794_v31, 2  ;;  %v802_v36 = vrot.slane %v794_v31, 3  ;;  %v1299_v37 = vpop.f32.mrb[11].mxu1  ;;  %v807_v49 = vadd.f32 %v794_v31, %v1602_v2 }
 0x753   :  { %v808_v21 = vadd.f32 %v800_v34, %v1600_v63  ;;  %v809_v14 = vadd.f32 %v801_v35, %v1605_v3  ;;  %v810_v29 = vadd.f32 %v802_v36, %v1613_v9 }
 0x755   :  { %v817_v38 = vrot.slane %v808_v21, 7  ;;  %v819_v40 = vrot.slane %v809_v14, 6  ;;  %v821_v39 = vrot.slane %v810_v29, 5 }
 0x757   :  { %v818_v41 = vsel %vm320_vm4, %v817_v38, %v807_v49 }
 0x758   :  { %v820_v42 = vsel %vm322_vm5, %v819_v40, %v818_v41 }
 0x759   :  { %v822_v44 = vsel %vm324_vm6, %v821_v39, %v820_v42 }
 0x75a   :  { %v825_v46 = vsel %vm824_vm9, %v822_v44, 0.0 }
 0x75b   :  { %826 = vadd.xlane.f32.xlu0 %v825_v46 }
 0x7e8   :  { %v827_v63 = vpop.xlane.xlu0 %826 }
 0x7e9   :  { %v828_v47 = vmul.f32 0.03125, %v827_v63 }
 0x7eb   :  { %v830_v3 = vrot.slane %v828_v47, 1  ;;  %v831_v48 = vrot.slane %v828_v47, 2  ;;  %v832_v9 = vrot.slane %v828_v47, 3  ;;  %v837_v51 = vsub.f32 %v807_v49, %v828_v47  ;;  %v1351_v47 = vld [vmem:[%s1808_s15 + $0x30] sm:$0xff]  }
 0x7ec   :  { %1321 = vmatpush3.bf16.msra.mxu0 %v1351_v47 }
 0x7ed   :  { %v838_v2 = vsub.f32 %v808_v21, %v830_v3  ;;  %v839_v52 = vsub.f32 %v809_v14, %v831_v48  ;;  %v840_v53 = vsub.f32 %v810_v29, %v832_v9  ;;  %v841_v45 = vmul.f32 %v837_v51, %v837_v51  ;;  %1322 = vmatprep.subr.bf16.mxu0 %v1400_v13  ;;  %v1352_v3 = vld [vmem:[%s1808_s15 + $0x38] sm:$0xff]   ;;  %v1230_v48 = vld [vmem:[%s1807_s14] ss:$0 sm:$0xff] }
 0x7ee   :  { %v1234_v13 = vld [vmem:[%s1809_s16] ss:$0 sm:$0xff] }
 0x7ef   :  { %v842_v12 = vmul.f32 %v838_v2, %v838_v2  ;;  %v843_v20 = vmul.f32 %v839_v52, %v839_v52  ;;  %v844_v50 = vmul.f32 %v840_v53, %v840_v53 }
 0x7f0   :  { %1323 = vmatpush3.bf16.msra.mxu0 %v1352_v3 }
 0x7f1   :  { %v849_v54 = vrot.slane %v842_v12, 7  ;;  %v851_v55 = vrot.slane %v843_v20, 6  ;;  %v853_v57 = vrot.slane %v844_v50, 5 }
 0x7f3   :  { %v850_v56 = vsel %vm320_vm4, %v849_v54, %v841_v45 }
 0x7f4   :  { %v852_v58 = vsel %vm322_vm5, %v851_v55, %v850_v56 }
 0x7f5   :  { %v854_v60 = vsel %vm324_vm6, %v853_v57, %v852_v58 }
 0x7f6   :  { %v856_v61 = vsel %vm824_vm9, %v854_v60, 0.0 }
 0x7f7   :  { %857 = vadd.xlane.f32.xlu1 %v856_v61 }
 0x884   :  { %v858_v8 = vpop.xlane.xlu1 %857 }
 0x885   :  { %v859_v10 = vmul.f32 0.03125, %v858_v8 }
 0x887   :  { %v860_v59 = vadd.f32 1e-05, %v859_v10 }
 0x889   :  { %1371 = vrsqrt.f32 %v860_v59 }
 0x893   :  { %v1372_v11 = vpop.eup %1371 }
 0x894   :  { %v863_v16 = vrot.slane %v1372_v11, 1  ;;  %v864_v17 = vrot.slane %v1372_v11, 2  ;;  %v865_v18 = vrot.slane %v1372_v11, 3  ;;  %v870_v19 = vmul.f32 %v1372_v11, %v837_v51 }
 0x896   :  { %v871_v23 = vmul.f32 %v863_v16, %v838_v2  ;;  %v872_v24 = vmul.f32 %v864_v17, %v839_v52  ;;  %v873_v26 = vmul.f32 %v865_v18, %v840_v53  ;;  %v880_v27 = vmul.f32 %v1228_v15, %v870_v19 }
 0x898   :  { %v881_v28 = vmul.f32 %v1228_v15, %v871_v23  ;;  %v882_v25 = vmul.f32 %v1228_v15, %v872_v24  ;;  %v883_v30 = vmul.f32 %v1228_v15, %v873_v26  ;;  %v890_v31 = vadd.f32 %v1229_v22, %v880_v27 }
 0x89a   :  { %v891_v32 = vadd.f32 %v1229_v22, %v881_v28  ;;  %v892_v33 = vadd.f32 %v1229_v22, %v882_v25  ;;  %v893_v34 = vadd.f32 %v1229_v22, %v883_v30  ;;  %v894_v35 = vpack.c.bf16 %v890_v31, %v890_v31 }
 0x89c   :  { %v895_v36 = vpack.c.bf16 %v891_v32, %v891_v32  ;;  %v896_v37 = vpack.c.bf16 %v892_v33, %v892_v33  ;;  %v897_v21 = vpack.c.bf16 %v893_v34, %v893_v34  ;;  %v913_v38 = vunpack.c.l.b16 %v894_v35 }
 0x89e   :  { %v914_v14 = vunpack.c.l.b16 %v895_v36  ;;  %v915_v29 = vunpack.c.l.b16 %v896_v37  ;;  %v916_v49 = vunpack.c.l.b16 %v897_v21 }
 0x8a0   :  { %v917_v40 = vrot.slane %v914_v14, 7  ;;  %v919_v41 = vrot.slane %v915_v29, 6  ;;  %v921_v42 = vrot.slane %v916_v49, 5 }
 0x8a2   :  { %v918_v39 = vsel %vm320_vm4, %v917_v40, %v913_v38 }
 0x8a3   :  { %v920_v44 = vsel %vm322_vm5, %v919_v41, %v918_v39  ;;  %v1243_v41 = vld [vmem:[%s1810_s17] ss:$0 sm:$0xff]  ;;  %s1375_s17 = scalar_lea.vmem %s1205_s20, 64 }
 0x8a4   :  { %v922_v46 = vsel %vm324_vm6, %v921_v42, %v920_v44  ;;  %p1376_p0 = scmp.ne.s32.totalorder %s1205_s20, %s1375_s17  ;;  %p1381_p2 = scmp.lt.s32.totalorder %s1375_s17, %s1375_s17 }
 0x8a5   :  { %v923_v63 = vpack.c.b16 %v922_v46, %v922_v46 }
 0x8a6   :  { %p1382_p3 = por %p1381_p2, %p1380_p1 }
 0x8a7   :  { %1305 = vmatmul.mubr.msk.bf16.vlgmr.msra.gmra.mrb[12].mxu1 %vm74_vm0, %v923_v63 }
 0x8a8   :  { %p1383_p4 = pnand %p1382_p3, %p1376_p0 }
 0x97a   :  { %v973_v9 = vpop.f32.mrb[12].mxu1 }
 0x97b   :  { %v974_v51 = vadd.f32 %v1230_v48, %v973_v9  ;;  %v1306_v2 = vpop.f32.mrb[13].mxu1  ;;  %v1244_v48 = vld [vmem:[%s1811_s18] ss:$0 sm:$0xff] }
 0x97c   :  { %v976_v52 = vpop.f32.mrb[14].mxu1 }
 0x97d   :  { %v979_v53 = vmax.f32 %v974_v51, 0.0  ;;  %v1307_v12 = vpop.f32.mrb[15].mxu1 }
 0x97f   :  { %v980_v20 = vpack.c.bf16 %v979_v53, %v979_v53 }
 0x981   :  { %1325 = vmatmul.mubr.bf16.vlgmr.msra.gmra.mrb[0].mxu0 %v980_v20 }
 0xa54   :  { %v1086_v50 = vpop.f32.mrb[0].mxu0 }
 0xa55   :  { %v1087_v45 = vadd.f32 %v1234_v13, %v1086_v50  ;;  %v1326_v54 = vpop.f32.mrb[1].mxu0 }
 0xa56   :  { %v1089_v55 = vpop.f32.mrb[2].mxu0 }
 0xa57   :  { %v1093_v56 = vrot.slane %v1087_v45, 1  ;;  %v1094_v57 = vrot.slane %v1087_v45, 2  ;;  %v1095_v58 = vrot.slane %v1087_v45, 3  ;;  %v1327_v60 = vpop.f32.mrb[3].mxu0  ;;  %v1100_v0 = vadd.f32 %v1087_v45, %v890_v31 }
 0xa59   :  { %v1101_v61 = vadd.f32 %v1093_v56, %v891_v32  ;;  %v1102_v43 = vadd.f32 %v1094_v57, %v892_v33  ;;  %v1103_v62 = vadd.f32 %v1095_v58, %v893_v34 }
 0xa5b   :  { %v1110_v1 = vrot.slane %v1101_v61, 7  ;;  %v1112_v4 = vrot.slane %v1102_v43, 6  ;;  %v1114_v6 = vrot.slane %v1103_v62, 5 }
 0xa5d   :  { %v1111_v5 = vsel %vm320_vm4, %v1110_v1, %v1100_v0 }
 0xa5e   :  { %v1113_v7 = vsel %vm322_vm5, %v1112_v4, %v1111_v5 }
 0xa5f   :  { %v1115_v8 = vsel %vm324_vm6, %v1114_v6, %v1113_v7 }
 0xa60   :  { %v1117_v10 = vsel %vm824_vm9, %v1115_v8, 0.0 }
 0xa61   :  { %1118 = vadd.xlane.f32.xlu0 %v1117_v10 }
 0xaee   :  { %v1119_v59 = vpop.xlane.xlu0 %1118 }
 0xaef   :  { %v1120_v11 = vmul.f32 0.03125, %v1119_v59 }
 0xaf1   :  { %v1122_v15 = vrot.slane %v1120_v11, 1  ;;  %v1123_v16 = vrot.slane %v1120_v11, 2  ;;  %v1124_v17 = vrot.slane %v1120_v11, 3  ;;  %v1129_v18 = vsub.f32 %v1100_v0, %v1120_v11 }
 0xaf3   :  { %v1130_v19 = vsub.f32 %v1101_v61, %v1122_v15  ;;  %v1131_v22 = vsub.f32 %v1102_v43, %v1123_v16  ;;  %v1132_v23 = vsub.f32 %v1103_v62, %v1124_v17  ;;  %v1133_v28 = vmul.f32 %v1129_v18, %v1129_v18 }
 0xaf5   :  { %v1134_v24 = vmul.f32 %v1130_v19, %v1130_v19  ;;  %v1135_v26 = vmul.f32 %v1131_v22, %v1131_v22  ;;  %v1136_v27 = vmul.f32 %v1132_v23, %v1132_v23 }
 0xaf7   :  { %v1141_v25 = vrot.slane %v1134_v24, 7  ;;  %v1143_v30 = vrot.slane %v1135_v26, 6  ;;  %v1145_v32 = vrot.slane %v1136_v27, 5 }
 0xaf9   :  { %v1142_v31 = vsel %vm320_vm4, %v1141_v25, %v1133_v28 }
 0xafa   :  { %v1144_v33 = vsel %vm322_vm5, %v1143_v30, %v1142_v31 }
 0xafb   :  { %v1146_v34 = vsel %vm324_vm6, %v1145_v32, %v1144_v33 }
 0xafc   :  { %v1148_v35 = vsel %vm824_vm9, %v1146_v34, 0.0 }
 0xafd   :  { %1149 = vadd.xlane.f32.xlu0 %v1148_v35 }
 0xb8a   :  { %v1150_v36 = vpop.xlane.xlu0 %1149 }
 0xb8b   :  { %v1151_v37 = vmul.f32 0.03125, %v1150_v36 }
 0xb8d   :  { %v1152_v21 = vadd.f32 1e-05, %v1151_v37 }
 0xb8f   :  { %1373 = vrsqrt.f32 %v1152_v21 }
 0xb99   :  { %v1374_v14 = vpop.eup %1373 }
 0xb9a   :  { %v1155_v29 = vrot.slane %v1374_v14, 1  ;;  %v1156_v49 = vrot.slane %v1374_v14, 2  ;;  %v1157_v38 = vrot.slane %v1374_v14, 3  ;;  %v1162_v40 = vmul.f32 %v1374_v14, %v1129_v18 }
 0xb9c   :  { %v1163_v39 = vmul.f32 %v1155_v29, %v1130_v19  ;;  %v1164_v42 = vmul.f32 %v1156_v49, %v1131_v22  ;;  %v1165_v44 = vmul.f32 %v1157_v38, %v1132_v23  ;;  %v1172_v46 = vmul.f32 %v1243_v41, %v1162_v40 }
 0xb9e   :  { %v1173_v63 = vmul.f32 %v1243_v41, %v1163_v39  ;;  %v1174_v47 = vmul.f32 %v1243_v41, %v1164_v42  ;;  %v1175_v3 = vmul.f32 %v1243_v41, %v1165_v44  ;;  %v1182_v52 = vadd.f32 %v1244_v48, %v1172_v46 }
 0xba0   :  { %v1183_v9 = vadd.f32 %v1244_v48, %v1173_v63  ;;  %v1184_v51 = vadd.f32 %v1244_v48, %v1174_v47  ;;  %v1185_v2 = vadd.f32 %v1244_v48, %v1175_v3 }
 0xba2   :  { %v1190_v53 = vrot.slane %v1183_v9, 7  ;;  %v1192_v12 = vrot.slane %v1184_v51, 6  ;;  %v1194_v13 = vrot.slane %v1185_v2, 5 }
 0xba4   :  { %v1191_v20 = vsel %vm320_vm4, %v1190_v53, %v1182_v52 }
 0xba5   :  { %v1193_v50 = vsel %vm322_vm5, %v1192_v12, %v1191_v20 }
 0xba6   :  { %v1195_v45 = vsel %vm324_vm6, %v1194_v13, %v1193_v50 }
 0xba7   :  { %1197 = vst.msk [vmem:[#allocation2] sm:$0xf] %vm824_vm9, %v1195_v45 }
 0xba8   :  { %1386 = shalt.err (!%p1383_p4)
}
 0xba9   :  { %s1387_s4 = scalar_lea.hbm %s1812_s19, 64 }
 0xbaa   :  { %p1388_p5 = scmp.ne.s32.totalorder %s1812_s19, %s1387_s4  ;;  %p1391_p6 = scmp.lt.u32.totalorder %s1387_s4, %s1812_s19 }
 0xbac   :  { %p1393_p7 = pnand %p1391_p6, %p1388_p5 }
 0xbae   :  { %1396 = shalt.err (!%p1393_p7)
}
 0xbaf   :  { %1207 = dma.vmem_to_hbm [thread:$0]  %s1205_s20, 64, %s1812_s19, [#allocation3]  }
 0xbb0   :  { %1397 = dma.done.wait [#allocation3], 64  }
 0xbb1   :  { %1398 = vsyncadd [#allocation3], 4294967232 }
 0xbb2   :  { %1211 = vsyncpa [#allocation3], 1 }

</bundles_post_ra>
